<compile_context>
chip_gen: v6e
topology: v6e:2x2x1
jax: 0.10.0
libtpu: 0.0.40
codegen_flags: <defaults>
</compile_context>

<pallas_src>
import functools

import jax
import jax.numpy as jnp
from jax.experimental import pallas as pl
from jax.experimental.pallas import tpu as pltpu

LANE = 128      # pad hidden / output feature dims to a multiple of this (lane-dense stores)
SUBLANE = 8     # f32 sublane granularity (batch tile must be a multiple)


def _round_up(n, m):
    return ((n + m - 1) // m) * m


def _choose_tb(batch, max_tb=512):
    """Largest batch tile <= max_tb that still yields >= 2 grid steps (v7x: 2 TCs)."""
    tb = max_tb
    while tb > SUBLANE and _round_up(batch, tb) // tb < 2:
        tb //= 2
    return max(tb, SUBLANE)


def _vmem_cap_bytes():
    """Per-generation VMEM cap: physical capacity minus headroom for Mosaic scratch."""
    try:
        cap = int(pltpu.get_tpu_info().vmem_capacity_bytes)
    except Exception:
        cap = 64 << 20                       # conservative fallback (v7x-sized)
    return max(cap - (16 << 20), 32 << 20)   # ~48 MiB on v7x, ~112 MiB on v5e/v6e


# ----------------------------- Pallas kernel --------------------------------

def _decoder_kernel(*refs, n_hidden):
    """Fused MLP + fused output-head matmul for one batch tile.

    refs = (x_ref,                                         # bf16 [TB, in_dim]
            W0, b0, ..., W_{n_hidden-1}, b_{n_hidden-1},   # hidden Linear+ReLU (bf16 W, f32 b)
            W_heads, b_heads,                              # fused output heads
            out_ref)                                       # f32  [TB, out_padded]
    All parameter blocks are VMEM-resident (same block every grid step, single-buffered).
    """
    x_ref = refs[0]
    param_refs = refs[1:1 + 2 * (n_hidden + 1)]
    out_ref = refs[-1]

    z = x_ref[...]                                        # bf16, straight to MXU

    # Hidden stack: bf16 operands into the MXU, f32 accumulate, f32 bias+ReLU on VPU.
    for i in range(n_hidden):
        w = param_refs[2 * i][...]                        # bf16 [din_p, dout_p]
        b = param_refs[2 * i + 1][...]                    # f32  [1, dout_p] (broadcasts)
        z = jnp.dot(z, w, preferred_element_type=jnp.float32) + b
        z = jnp.maximum(z, 0.0).astype(jnp.bfloat16)

    # Fused output heads: single lane-dense matmul + store.
    wh = param_refs[2 * n_hidden][...]                    # bf16 [dlast_p, out_p]
    bh = param_refs[2 * n_hidden + 1][...]                # f32  [1, out_p]
    y = jnp.dot(z, wh, preferred_element_type=jnp.float32) + bh
    out_ref[...] = y.astype(out_ref.dtype)


# ------------------------ one-time parameter packing -------------------------

def pack_decoder_params(input_dim, hidden_params, head_params):
    """Pad / concatenate / bf16-cast all parameters ONCE (hoisted out of the forward).

    hidden_params: list of (W [in, out] f32, b [out] f32) for the Linear+ReLU stack
    head_params:   list of (W [in, nf_i] f32, b [nf_i] f32) output heads
    """
    n_hidden = len(hidden_params)
    out_feats = [int(w.shape[1]) for w, _ in head_params]
    sum_out = sum(out_feats)

    # Padded dims: input feature dim stays unpadded; hidden/output dims -> 128 multiples.
    dims = [input_dim] + [int(w.shape[1]) for w, _ in hidden_params]
    dims_p = [input_dim] + [_round_up(d, LANE) for d in dims[1:]]
    out_p = _round_up(sum_out, LANE)

    flat_params = []
    for i, (w, b) in enumerate(hidden_params):
        wp = jnp.zeros((dims_p[i], dims_p[i + 1]), jnp.float32)
        wp = wp.at[:w.shape[0], :w.shape[1]].set(w)
        bp = jnp.zeros((1, dims_p[i + 1]), jnp.float32).at[0, :b.shape[0]].set(b)
        flat_params += [wp.astype(jnp.bfloat16), bp]

    w_heads = jnp.concatenate([w for w, _ in head_params], axis=1)     # [dlast, sum_out]
    b_heads = jnp.concatenate([b for _, b in head_params], axis=0)     # [sum_out]
    whp = jnp.zeros((dims_p[-1], out_p), jnp.float32)
    whp = whp.at[:w_heads.shape[0], :sum_out].set(w_heads)
    bhp = jnp.zeros((1, out_p), jnp.float32).at[0, :sum_out].set(b_heads)
    flat_params += [whp.astype(jnp.bfloat16), bhp]

    flat_params = [jax.device_put(p) for p in flat_params]

    return {
        "flat_params": flat_params,
        "n_hidden": n_hidden,
        "input_dim": input_dim,
        "dims_p": dims_p,
        "out_p": out_p,
        "out_feats": out_feats,
    }


# ------------------------------ wrapper --------------------------------------

def decoder_forward(z, packed, *, tb=None):
    """Run the fused decoder kernel.

    z:       [batch, input_dim] float32 (or bfloat16)
    packed:  result of pack_decoder_params (pre-padded bf16 weights, f32 biases)
    returns: list of [batch, nf_i] float32 arrays (one per output module)
    """
    n_hidden = packed["n_hidden"]
    input_dim = packed["input_dim"]
    dims_p = packed["dims_p"]
    out_p = packed["out_p"]
    out_feats = packed["out_feats"]
    flat_params = packed["flat_params"]

    batch = z.shape[0]
    if tb is None:
        tb = _choose_tb(batch)
    batch_p = _round_up(batch, tb)

    # ---- input: bf16 cast + batch pad only (feature dim stays unpadded) ------
    zb = z.astype(jnp.bfloat16)
    if batch_p != batch:
        zb = jnp.pad(zb, ((0, batch_p - batch), (0, 0)))

    # ---- specs ---------------------------------------------------------------
    grid = (batch_p // tb,)
    resident = lambda i: (0, 0)

    in_specs = [pl.BlockSpec((tb, input_dim), lambda i: (i, 0))]
    for p in flat_params:
        # Grid-invariant weights/biases: single-buffered VMEM residents.
        in_specs.append(pl.BlockSpec(p.shape, resident, pipeline_mode=pl.Buffered(1)))
    out_specs = pl.BlockSpec((tb, out_p), lambda i: (i, 0))
    out_shape = jax.ShapeDtypeStruct((batch_p, out_p), jnp.float32)

    # ---- VMEM budget + cost estimate ----------------------------------------
    cap = _vmem_cap_bytes()
    param_bytes = sum(int(p.size) * p.dtype.itemsize for p in flat_params)   # single buffer
    in_tile_bytes = 2 * tb * input_dim * 2                                   # bf16, dbl-buffered
    out_tile_bytes = 2 * tb * out_p * 4                                      # f32, dbl-buffered
    act_bytes = 4 * tb * max(dims_p + [out_p]) * 4                           # activation headroom
    vmem_limit = param_bytes + in_tile_bytes + out_tile_bytes + act_bytes + (2 << 20)
    vmem_limit = int(min(max(vmem_limit, 4 << 20), cap))
    if param_bytes + in_tile_bytes + out_tile_bytes + act_bytes > cap:
        # TODO(synk): weight-slab-tiled fallback for very large decoders (esp. v7x).
        raise NotImplementedError("packed decoder weights exceed the VMEM budget")

    flops = 2 * batch_p * (sum(dims_p[i] * dims_p[i + 1] for i in range(n_hidden))
                           + dims_p[-1] * out_p)
    bytes_accessed = int(zb.nbytes) + param_bytes + batch_p * out_p * 4
    cost = pl.CostEstimate(flops=flops, transcendentals=0, bytes_accessed=bytes_accessed)

    kernel = functools.partial(_decoder_kernel, n_hidden=n_hidden)

    out_full = pl.pallas_call(
        kernel,
        grid=grid,
        in_specs=in_specs,
        out_specs=out_specs,
        out_shape=out_shape,
        compiler_params=pltpu.CompilerParams(
            dimension_semantics=("parallel",),
            vmem_limit_bytes=vmem_limit,
        ),
        cost_estimate=cost,
    )(zb, *flat_params)

    # ---- split fused head output back into per-module arrays ----------------
    outs = []
    off = 0
    for nf in out_feats:
        outs.append(out_full[:batch, off:off + nf])
        off += nf
    return outs


# --------------------------- parameter construction -------------------------

def _init_linear(key, fan_in, fan_out, dtype=jnp.float32):
    """Deterministic init mimicking torch.nn.Linear default U(-1/sqrt(fan_in), +)."""
    kw, kb = jax.random.split(key)
    bound = 1.0 / jnp.sqrt(jnp.float32(fan_in))
    w = jax.random.uniform(kw, (fan_in, fan_out), dtype, minval=-bound, maxval=bound)
    b = jax.random.uniform(kb, (fan_out,), dtype, minval=-bound, maxval=bound)
    return w, b


def make_decoder_params(key, input_dim, hidden_dims, out_features):
    hidden_params = []
    d = input_dim
    for h in hidden_dims:
        key, sub = jax.random.split(key)
        hidden_params.append(_init_linear(sub, d, h))
        d = h
    head_params = []
    for nf in out_features:
        key, sub = jax.random.split(key)
        head_params.append(_init_linear(sub, d, nf))
    return hidden_params, head_params


# ------------------------------ references (JAX) -----------------------------

def decoder_forward_ref_f32(z, hidden_params, head_params):
    """Pure-f32 reference (matches the PyTorch module semantics)."""
    for w, b in hidden_params:
        z = jnp.maximum(z @ w + b[None, :], 0.0)
    return [z @ w + b[None, :] for w, b in head_params]


def decoder_forward_ref_bf16(z, hidden_params, head_params):
    """Reference mimicking the kernel's bf16-operand / f32-accumulate matmuls."""
    z = z.astype(jnp.bfloat16)
    for w, b in hidden_params:
        z = jnp.dot(z, w.astype(jnp.bfloat16),
                    preferred_element_type=jnp.float32) + b[None, :]
        z = jnp.maximum(z, 0.0).astype(jnp.bfloat16)
    outs = []
    for w, b in head_params:
        outs.append(jnp.dot(z, w.astype(jnp.bfloat16),
                            preferred_element_type=jnp.float32) + b[None, :])
    return outs


# ----------------------------------- main ------------------------------------

if __name__ == "__main__":
    key = jax.random.PRNGKey(0)

    # Small shapes consistent with the module's forward (batch tiled by the grid).
    batch = 256
    input_dim = 32
    hidden_dims = [64, 32]
    out_features = [16, 8]          # one per output module (n_features each)

    k_x, k_p = jax.random.split(key)
    z = jax.random.normal(k_x, (batch, input_dim), dtype=jnp.float32)
    hidden_params, head_params = make_decoder_params(k_p, input_dim, hidden_dims, out_features)

    # One-time packing (would live at model-init time in a real pipeline).
    packed = pack_decoder_params(input_dim, hidden_params, head_params)

    outs = decoder_forward(z, packed)
    outs = [jax.block_until_ready(o) for o in outs]

    refs_bf16 = decoder_forward_ref_bf16(z, hidden_params, head_params)
    refs_f32 = decoder_forward_ref_f32(z, hidden_params, head_params)
    for o, rb, rf in zip(outs, refs_bf16, refs_f32):
        assert o.shape == rb.shape and o.dtype == jnp.float32
        # Tight check vs. the same bf16-operand math.
        assert jnp.allclose(o, rb, atol=2e-3, rtol=2e-3), "mismatch vs bf16 reference"
        # Loose sanity check vs. the pure-f32 PyTorch-equivalent semantics.
        assert jnp.allclose(o, rf, atol=5e-2, rtol=5e-2), "mismatch vs f32 reference"

    print("KERNEL_OK")
</pallas_src>

<mosaic_0001>
module attributes {stable_mosaic.version = 11 : i64} {
  func.func @_decoder_kernel(%arg0: i32, %arg1: memref<128x32xbf16, #tpu.memory_space<vmem>>, %arg2: memref<32x128xbf16, #tpu.memory_space<vmem>>, %arg3: memref<1x128xf32, #tpu.memory_space<vmem>>, %arg4: memref<128x128xbf16, #tpu.memory_space<vmem>>, %arg5: memref<1x128xf32, #tpu.memory_space<vmem>>, %arg6: memref<128x128xbf16, #tpu.memory_space<vmem>>, %arg7: memref<1x128xf32, #tpu.memory_space<vmem>>, %arg8: memref<128x128xf32, #tpu.memory_space<vmem>>) attributes {dimension_semantics = [#tpu.dimension_semantics<parallel>], iteration_bounds = array<i64: 2>, scalar_prefetch = 0 : i64, scratch_operands = 0 : i64, tpu.core_type = #tpu.core_type<tc>, window_params = [{transform_indices = @transform_0, window_bounds = array<i64: 128, 32>}, {pipeline_mode = #tpu.pipeline_mode<synchronous>, transform_indices = @transform_1, window_bounds = array<i64: 32, 128>}, {pipeline_mode = #tpu.pipeline_mode<synchronous>, transform_indices = @transform_2, window_bounds = array<i64: 1, 128>}, {pipeline_mode = #tpu.pipeline_mode<synchronous>, transform_indices = @transform_3, window_bounds = array<i64: 128, 128>}, {pipeline_mode = #tpu.pipeline_mode<synchronous>, transform_indices = @transform_4, window_bounds = array<i64: 1, 128>}, {pipeline_mode = #tpu.pipeline_mode<synchronous>, transform_indices = @transform_5, window_bounds = array<i64: 128, 128>}, {pipeline_mode = #tpu.pipeline_mode<synchronous>, transform_indices = @transform_6, window_bounds = array<i64: 1, 128>}, {transform_indices = @transform_7, window_bounds = array<i64: 128, 128>}]} {
    %c0 = arith.constant 0 : index
    %c0_0 = arith.constant 0 : index
    %0 = vector.load %arg1[%c0, %c0_0] : memref<128x32xbf16, #tpu.memory_space<vmem>>, vector<128x32xbf16>
    %c0_1 = arith.constant 0 : index
    %c0_2 = arith.constant 0 : index
    %1 = vector.load %arg2[%c0_1, %c0_2] : memref<32x128xbf16, #tpu.memory_space<vmem>>, vector<32x128xbf16>
    %c0_3 = arith.constant 0 : index
    %c0_4 = arith.constant 0 : index
    %2 = vector.load %arg3[%c0_3, %c0_4] : memref<1x128xf32, #tpu.memory_space<vmem>>, vector<1x128xf32>
    %cst = arith.constant dense<0.000000e+00> : vector<128x128xf32>
    %3 = tpu.matmul %0, %1, %cst {dimension_numbers = #tpu.dot_dimension_numbers<[1], [0], [0], [1], [0, 0, 1, 1], [], []>} : vector<128x32xbf16>, vector<32x128xbf16>, vector<128x128xf32> -> vector<128x128xf32>
    %4 = vector.broadcast %2 : vector<1x128xf32> to vector<128x128xf32>
    %5 = arith.addf %3, %4 : vector<128x128xf32>
    %cst_5 = arith.constant 0.000000e+00 : f32
    %6 = vector.broadcast %cst_5 : f32 to vector<128x128xf32>
    %7 = arith.maximumf %5, %6 : vector<128x128xf32>
    %8 = arith.truncf %7 : vector<128x128xf32> to vector<128x128xbf16>
    %c0_6 = arith.constant 0 : index
    %c0_7 = arith.constant 0 : index
    %9 = vector.load %arg4[%c0_6, %c0_7] : memref<128x128xbf16, #tpu.memory_space<vmem>>, vector<128x128xbf16>
    %c0_8 = arith.constant 0 : index
    %c0_9 = arith.constant 0 : index
    %10 = vector.load %arg5[%c0_8, %c0_9] : memref<1x128xf32, #tpu.memory_space<vmem>>, vector<1x128xf32>
    %cst_10 = arith.constant dense<0.000000e+00> : vector<128x128xf32>
    %11 = tpu.matmul %8, %9, %cst_10 {dimension_numbers = #tpu.dot_dimension_numbers<[1], [0], [0], [1], [0, 0, 1, 1], [], []>} : vector<128x128xbf16>, vector<128x128xbf16>, vector<128x128xf32> -> vector<128x128xf32>
    %12 = vector.broadcast %10 : vector<1x128xf32> to vector<128x128xf32>
    %13 = arith.addf %11, %12 : vector<128x128xf32>
    %cst_11 = arith.constant 0.000000e+00 : f32
    %14 = vector.broadcast %cst_11 : f32 to vector<128x128xf32>
    %15 = arith.maximumf %13, %14 : vector<128x128xf32>
    %16 = arith.truncf %15 : vector<128x128xf32> to vector<128x128xbf16>
    %c0_12 = arith.constant 0 : index
    %c0_13 = arith.constant 0 : index
    %17 = vector.load %arg6[%c0_12, %c0_13] : memref<128x128xbf16, #tpu.memory_space<vmem>>, vector<128x128xbf16>
    %c0_14 = arith.constant 0 : index
    %c0_15 = arith.constant 0 : index
    %18 = vector.load %arg7[%c0_14, %c0_15] : memref<1x128xf32, #tpu.memory_space<vmem>>, vector<1x128xf32>
    %cst_16 = arith.constant dense<0.000000e+00> : vector<128x128xf32>
    %19 = tpu.matmul %16, %17, %cst_16 {dimension_numbers = #tpu.dot_dimension_numbers<[1], [0], [0], [1], [0, 0, 1, 1], [], []>} : vector<128x128xbf16>, vector<128x128xbf16>, vector<128x128xf32> -> vector<128x128xf32>
    %20 = vector.broadcast %18 : vector<1x128xf32> to vector<128x128xf32>
    %21 = arith.addf %19, %20 : vector<128x128xf32>
    %c0_17 = arith.constant 0 : index
    %c0_18 = arith.constant 0 : index
    %22 = vector.load %arg8[%c0_17, %c0_18] : memref<128x128xf32, #tpu.memory_space<vmem>>, vector<128x128xf32>
    tpu.vector_store %arg8[%c0_17, %c0_18], %21 {strides = array<i32>} : memref<128x128xf32, #tpu.memory_space<vmem>>, vector<128x128xf32>,
    return
  }
  func.func @transform_0(%arg0: i32) -> (i32, i32) {
    %c0_i32 = arith.constant 0 : i32
    %c0_i32_0 = arith.constant 0 : i32
    return %arg0, %c0_i32 : i32, i32
  }
  func.func @transform_1(%arg0: i32) -> (i32, i32) {
    %c0_i32 = arith.constant 0 : i32
    %c0_i32_0 = arith.constant 0 : i32
    %c0_i32_1 = arith.constant 0 : i32
    return %c0_i32, %c0_i32_0 : i32, i32
  }
  func.func @transform_2(%arg0: i32) -> (i32, i32) {
    %c0_i32 = arith.constant 0 : i32
    %c0_i32_0 = arith.constant 0 : i32
    %c0_i32_1 = arith.constant 0 : i32
    return %c0_i32, %c0_i32_0 : i32, i32
  }
  func.func @transform_3(%arg0: i32) -> (i32, i32) {
    %c0_i32 = arith.constant 0 : i32
    %c0_i32_0 = arith.constant 0 : i32
    %c0_i32_1 = arith.constant 0 : i32
    return %c0_i32, %c0_i32_0 : i32, i32
  }
  func.func @transform_4(%arg0: i32) -> (i32, i32) {
    %c0_i32 = arith.constant 0 : i32
    %c0_i32_0 = arith.constant 0 : i32
    %c0_i32_1 = arith.constant 0 : i32
    return %c0_i32, %c0_i32_0 : i32, i32
  }
  func.func @transform_5(%arg0: i32) -> (i32, i32) {
    %c0_i32 = arith.constant 0 : i32
    %c0_i32_0 = arith.constant 0 : i32
    %c0_i32_1 = arith.constant 0 : i32
    return %c0_i32, %c0_i32_0 : i32, i32
  }
  func.func @transform_6(%arg0: i32) -> (i32, i32) {
    %c0_i32 = arith.constant 0 : i32
    %c0_i32_0 = arith.constant 0 : i32
    %c0_i32_1 = arith.constant 0 : i32
    return %c0_i32, %c0_i32_0 : i32, i32
  }
  func.func @transform_7(%arg0: i32) -> (i32, i32) {
    %c0_i32 = arith.constant 0 : i32
    %c0_i32_0 = arith.constant 0 : i32
    return %arg0, %c0_i32 : i32, i32
  }
}

</mosaic_0001>

<bundles_post_ra>
// kernel: tpu_custom_call.1
= control target key start
LH: loop header
LB: loop body
LE: loop exit
PB: predicated region body
PF: predicated region fallthrough
CT: control target
= control target key end

     0   :  { %12 = vsyncpa [#allocation3], 0  ;;  %s1501_s0 = inlined_call_operand.vmem [shape: bf16[256,32], index: 0, kind: input, shape index: {}]   ;;  %s1502_s1 = inlined_call_operand.vmem [shape: bf16[32,128], index: 1, kind: input, shape index: {}]   ;;  %s1503_s2 = inlined_call_operand.vmem [shape: f32[1,128], index: 2, kind: input, shape index: {}]   ;;  %s1504_s3 = inlined_call_operand.vmem [shape: bf16[128,128], index: 3, kind: input, shape index: {}]   ;;  %s1505_s4 = inlined_call_operand.vmem [shape: f32[1,128], index: 4, kind: input, shape index: {}]   ;;  %s1506_s5 = inlined_call_operand.vmem [shape: bf16[128,128], index: 5, kind: input, shape index: {}]   ;;  %s1507_s6 = inlined_call_operand.vmem [shape: f32[1,128], index: 6, kind: input, shape index: {}]   ;;  %s1508_s7 = inlined_call_operand.hbm [shape: f32[256,128], index: 7, kind: output, shape index: {}]  }
   0x1   :  { %14 = vsyncpa [#allocation3 + $0x1], 0  ;;  %s1306_s24 = smov 0   ;;  %s1308_s25 = smov 0  }
   0x2   :  { %s1310_s26 = smov 0   ;;  %s1312_s27 = smov 0  }
   0x3 LB: > { %s1327_s28 = sadd.s32 4294967295, %s1261_s27   ;;  %s958_s29 = sadd.s32 4294967294, %s1261_s27   ;;  %s1261_s27 = sphi %s1312_s27, %s1514_s27   ;;  %s1257_s26 = sphi %s1310_s26, %s1513_s26   ;;  %s1253_s25 = sphi %s1308_s25, %s1512_s25   ;;  %s1249_s24 = sphi %s1306_s24, %s1511_s24  }
   0x4   : > { %s1331_s30 = sadd.s32 1, %s1261_s27   ;;  %s179_s8 = sadd.s32 1, %s1257_s26 }
   0x5   : > { %s176_s9 = ssub.s32 %s1261_s27, %s1331_s30  ;;  %p189_p0 = scmp.ne.s32.totalorder %s1257_s26, %s1253_s25 }
   0x6   : > { %p177_p1 = scmp.eq.s32.totalorder %s176_s9, 0  ;;  %p190_p2 = scmp.eq.s32.totalorder %s1327_s28, 1 }
   0x7   : > { %p195_p3 = scmp.ne.s32.totalorder %s1253_s25, %s1249_s24  ;;  %p196_p4 = scmp.eq.s32.totalorder %s958_s29, 1 }
   0x8   : > { %s1342_s10 = scalar_select %p177_p1, %s1257_s26, %s179_s8  }
   0x9   : > { %p1344_p5 = por %p190_p2, %p189_p0  ;;  %p1348_p6 = por %p196_p4, %p195_p3 }
   0xa   : > { %p961_p7 = scmp.ge.s32.totalorder %s1261_s27, 1  ;;  %p241_p8 = scmp.lt.s32.totalorder %s1261_s27, 3 }
   0xc   : > { %p242_p9 = pnand %p961_p7, %p241_p8 }
   0xd   : > { %s963_s15 = sshll.u32 (!%p242_p9), %s1327_s28, 4  ;;  %s270_s16 = sand.u32 (!%p242_p9), 1, %s1253_s25  }
   0xe   : > { %245 = sbr.rel (%p242_p9) target bundleno = 679 (0x2a7), region = 48  ;;  %p274_p10 = scmp.lt.s32.totalorder (!%p242_p9), %s963_s15, 31 }
   0xf   : > { %s962_s17 = sshll.u32 (!%p242_p9), %s270_s16, 7  ;;  %s1007_s21 = sshll.u32 (!%p242_p9), %s1327_s28, 11 }
  0x10   : > { %s1432_s20 = scalar_lea.vmem (!%p242_p9), [#allocation2], %s962_s17  ;;  %s1461_s28 = scalar_lea.sflag (!%p242_p9), [#allocation3], %s270_s16 }
  0x11   : > { %s1263_s13 = smov (!%p242_p9), [#allocation2]  }
  0x12   : > { %s1205_s14 = sshll.u32 (!%p242_p9), %s1263_s13, 4  ;;  %s1206_s14 = int_to_ptr.vmem [resolvable:$false] %s1205_s14 }
  0x13   : > { %v1175_v0 = vld [vmem:[%s1502_s1 + $0x8] sm:$0xff]   ;;  %v1176_v1 = vld [vmem:[%s1502_s1] sm:$0xff]   ;;  %v1185_v2 = vld [vmem:[%s1504_s3 + $0x38] sm:$0xff]   ;;  %s1516_s15 = smov (!%p274_p10, %s963_s15), 31  ;;  %vm360_vm0 = vcmask 261120  }
  0x14   : > { %1050 = vmatprep.subr.bf16.mxu0 %v1175_v0  ;;  %v1186_v3 = vld [vmem:[%s1504_s3 + $0x30] sm:$0xff]   ;;  %1070 = vmatprep.subr.bf16.mxu1 %v1185_v2  ;;  %s964_s22 = sshll.u32 %s1516_s15, 2  ;;  %v1187_v4 = vld [vmem:[%s1504_s3 + $0x28] sm:$0xff]   ;;  %v1188_v8 = vld [vmem:[%s1504_s3 + $0x20] sm:$0xff]   ;;  %s1207_s15 = scalar_lea.vmem %s1206_s14, 4096 }
  0x15   : > { %1051 = vmatpush3.bf16.msra.mxu0 %v1175_v0  ;;  %1071 = vmatpush3.bf16.msra.mxu1 %v1185_v2  ;;  %s277_s8 = scalar_lea.vmem %s1501_s0, %s964_s22  ;;  %v1189_v9 = vld [vmem:[%s1504_s3 + $0x18] sm:$0xff]   ;;  %v1190_v15 = vld [vmem:[%s1504_s3 + $0x10] sm:$0xff]   ;;  %v1191_v16 = vld [vmem:[%s1504_s3 + $0x8] sm:$0xff]   ;;  %s896_s22 = sshll.u32 %s1432_s20, 4  ;;  %s1455_s22 = int_to_ptr.vmem [resolvable:$true] %s896_s22 }
  0x16   : > { %1052 = vmatprep.subr.bf16.mxu0 %v1176_v1  ;;  %1072 = vmatprep.subr.bf16.mxu1 %v1186_v3  ;;  %v1177_v5 = vld [vmem:[%s277_s8] sm:$0xff]   ;;  %v1178_v6 = vld [vmem:[%s277_s8 + $0x8] sm:$0xff]   ;;  %v1179_v7 = vld [vmem:[%s277_s8 + $0x10] sm:$0xff]   ;;  %s1201_s9 = scalar_lea.vmem %s1455_s22, 2048  ;;  %p1208_p0 = scmp.lt.s32.totalorder %s1455_s22, %s1206_s14 }
  0x17   : > { %1054 = vmatprep.mubr.msk.bf16.mxu0 %vm360_vm0, %v1177_v5  ;;  %v1180_v10 = vld [vmem:[%s277_s8 + $0x18] sm:$0xff]   ;;  %v1181_v11 = vld [vmem:[%s277_s8 + $0x20] sm:$0xff]   ;;  %v1182_v12 = vld [vmem:[%s277_s8 + $0x28] sm:$0xff]   ;;  %p1202_p11 = scmp.ne.s32.totalorder %s1455_s22, %s1201_s9  ;;  %p1209_p1 = scmp.lt.s32.totalorder %s1207_s15, %s1201_s9 }
  0x18   : > { %v1183_v13 = vld [vmem:[%s277_s8 + $0x30] sm:$0xff]   ;;  %v1184_v14 = vld [vmem:[%s277_s8 + $0x38] sm:$0xff]   ;;  %v1192_v17 = vld [vmem:[%s1504_s3] sm:$0xff]   ;;  %s1453_s8 = scalar_lea.hbm %s1508_s7, %s1007_s21 }
  0x19   : > { %1053 = vmatpush3.bf16.msra.mxu0 %v1176_v1  ;;  %1073 = vmatpush3.bf16.msra.mxu1 %v1186_v3  ;;  %v1193_v18 = vld [vmem:[%s1506_s5 + $0x38] sm:$0xff]   ;;  %v1194_v19 = vld [vmem:[%s1506_s5 + $0x30] sm:$0xff]   ;;  %v1195_v20 = vld [vmem:[%s1506_s5 + $0x28] sm:$0xff]   ;;  %p1203_p12 = pnand %p1202_p11, %p1344_p5  ;;  %p1210_p2 = por %p1209_p1, %p1208_p0 }
  0x1a   : > { %1074 = vmatprep.subr.bf16.mxu1 %v1187_v4  ;;  %1102 = vmatprep.subr.bf16.mxu0 %v1193_v18  ;;  %v1196_v21 = vld [vmem:[%s1506_s5 + $0x20] sm:$0xff]   ;;  %v1197_v22 = vld [vmem:[%s1506_s5 + $0x18] sm:$0xff]  }
  0x1b   : > { %v965_v25 = vld [vmem:[%s1503_s2] ss:$0 sm:$0xff]  ;;  %p1204_p13 = pneg %p1203_p12 }
  0x1c   : > { %1055 = vmatmul.mubr.msk.bf16.vlgmr.msra.gmra.mxu0 %vm360_vm0, %v1178_v6 }
  0x1d   : > { %1058 = vmatprep.mubr.msk.bf16.mxu0 %vm360_vm0, %v1179_v7  ;;  %1075 = vmatpush3.bf16.msra.mxu1 %v1187_v4  ;;  %p1211_p3 = pnand %p1210_p2, %p1204_p13 }
  0x1e   : > { %1076 = vmatprep.subr.bf16.mxu1 %v1188_v8  ;;  %1103 = vmatpush3.bf16.msra.mxu0 %v1193_v18  ;;  %v1200_v18 = vld [vmem:[%s1506_s5] sm:$0xff]  }
  0x1f   : > { %1104 = vmatprep.subr.bf16.mxu0 %v1194_v19 }
  0x21   : > { %1077 = vmatpush3.bf16.msra.mxu1 %v1188_v8 }
  0x22   : > { %1078 = vmatprep.subr.bf16.mxu1 %v1189_v9  ;;  %1105 = vmatpush3.bf16.msra.mxu0 %v1194_v19 }
  0x23   : > { %1106 = vmatprep.subr.bf16.mxu0 %v1195_v20 }
  0x24   : > { %1059 = vmatmul.mubr.msk.bf16.gmra.mxu0 %vm360_vm0, %v1180_v10 }
  0x25   : > { %1062 = vmatprep.mubr.msk.bf16.mxu0 %vm360_vm0, %v1181_v11  ;;  %1079 = vmatpush3.bf16.msra.mxu1 %v1189_v9 }
  0x26   : > { %1080 = vmatprep.subr.bf16.mxu1 %v1190_v15  ;;  %1107 = vmatpush3.bf16.msra.mxu0 %v1195_v20 }
  0x27   : > { %1108 = vmatprep.subr.bf16.mxu0 %v1196_v21 }
  0x29   : > { %1081 = vmatpush3.bf16.msra.mxu1 %v1190_v15 }
  0x2a   : > { %1082 = vmatprep.subr.bf16.mxu1 %v1191_v16  ;;  %1109 = vmatpush3.bf16.msra.mxu0 %v1196_v21  ;;  %v984_v21 = vld [vmem:[%s1505_s4] ss:$0 sm:$0xff] }
  0x2b   : > { %1110 = vmatprep.subr.bf16.mxu0 %v1197_v22 }
  0x2c   : > { %1063 = vmatmul.mubr.msk.bf16.gmra.mxu0 %vm360_vm0, %v1182_v12 }
  0x2d   : > { %1066 = vmatprep.mubr.msk.bf16.mxu0 %vm360_vm0, %v1183_v13  ;;  %1083 = vmatpush3.bf16.msra.mxu1 %v1191_v16  ;;  %v1198_v16 = vld [vmem:[%s1506_s5 + $0x10] sm:$0xff]  }
  0x2e   : > { %1084 = vmatprep.subr.bf16.mxu1 %v1192_v17  ;;  %1111 = vmatpush3.bf16.msra.mxu0 %v1197_v22 }
  0x2f   : > { %1112 = vmatprep.subr.bf16.mxu0 %v1198_v16 }
  0x31   : > { %1085 = vmatpush3.bf16.msra.mxu1 %v1192_v17  ;;  %v1199_v17 = vld [vmem:[%s1506_s5 + $0x8] sm:$0xff]  }
  0x32   : > { %1113 = vmatpush3.bf16.msra.mxu0 %v1198_v16 }
  0x33   : > { %1114 = vmatprep.subr.bf16.mxu0 %v1199_v17 }
  0x34   : > { %1067 = vmatmul.mubr.msk.bf16.gmra.mxu0 %vm360_vm0, %v1184_v14 }
  0x36   : > { %1115 = vmatpush3.bf16.msra.mxu0 %v1199_v17 }
  0x37   : > { %1116 = vmatprep.subr.bf16.mxu0 %v1200_v18 }
  0x3a   : > { %1117 = vmatpush3.bf16.msra.mxu0 %v1200_v18 }
  0xdc   : > { %v1056_v23 = vpop.f32.mrf.mxu0 }
  0xdd   : > { %v428_v29 = vadd.f32 %v1056_v23, %v965_v25 }
  0xde   : > { %v419_v24 = vpop.f32.mrf.mxu0 }
  0xdf   : > { %v420_v27 = vadd.f32 %v965_v25, %v419_v24  ;;  %v484_v36 = vmax.f32 %v428_v29, 0.0 }
  0xe0   : > { %v1057_v26 = vpop.f32.mrf.mxu0 }
  0xe1   : > { %v431_v28 = vadd.f32 %v1057_v26, %v965_v25  ;;  %v482_v34 = vmax.f32 %v420_v27, 0.0 }
  0xe2   : > { %v422_v30 = vpop.f32.mrf.mxu0 }
  0xe3   : > { %v423_v31 = vadd.f32 %v965_v25, %v422_v30  ;;  %v485_v32 = vmax.f32 %v431_v28, 0.0 }
  0xe4   : > { %v1060_v33 = vpop.f32.mrf.mxu0 }
  0xe5   : > { %v483_v35 = vmax.f32 %v423_v31, 0.0  ;;  %v499_v39 = vpack.c.bf16 %v485_v32, %v484_v36  ;;  %v444_v43 = vadd.f32 %v1060_v33, %v965_v25 }
  0xe6   : > { %v435_v37 = vpop.f32.mrf.mxu0 }
  0xe7   : > { %v498_v38 = vpack.c.bf16 %v483_v35, %v482_v34  ;;  %v436_v41 = vadd.f32 %v965_v25, %v435_v37  ;;  %v488_v50 = vmax.f32 %v444_v43, 0.0 }
  0xe8   : > { %v1061_v40 = vpop.f32.mrf.mxu0 }
  0xe9   : > { %v447_v42 = vadd.f32 %v1061_v40, %v965_v25  ;;  %1086 = vmatprep.mubr.bf16.mxu1 %v498_v38  ;;  %v486_v48 = vmax.f32 %v436_v41, 0.0 }
  0xea   : > { %v438_v44 = vpop.f32.mrf.mxu0  ;;  %1087 = vmatmul.mubr.bf16.vlgmr.msra.gmra.mxu1 %v499_v39 }
  0xeb   : > { %v439_v45 = vadd.f32 %v965_v25, %v438_v44  ;;  %v489_v46 = vmax.f32 %v447_v42, 0.0 }
  0xec   : > { %v1064_v47 = vpop.f32.mrf.mxu0 }
  0xed   : > { %v487_v49 = vmax.f32 %v439_v45, 0.0  ;;  %v501_v53 = vpack.c.bf16 %v489_v46, %v488_v50  ;;  %v460_v57 = vadd.f32 %v1064_v47, %v965_v25 }
  0xee   : > { %v451_v51 = vpop.f32.mrf.mxu0 }
  0xef   : > { %v500_v52 = vpack.c.bf16 %v487_v49, %v486_v48  ;;  %v452_v55 = vadd.f32 %v965_v25, %v451_v51  ;;  %v492_v0 = vmax.f32 %v460_v57, 0.0 }
  0xf0   : > { %v1065_v54 = vpop.f32.mrf.mxu0 }
  0xf1   : > { %v463_v56 = vadd.f32 %v1065_v54, %v965_v25  ;;  %1090 = vmatprep.mubr.bf16.mxu1 %v500_v52  ;;  %v490_v62 = vmax.f32 %v452_v55, 0.0 }
  0xf2   : > { %v454_v58 = vpop.f32.mrf.mxu0  ;;  %1091 = vmatmul.mubr.bf16.gmra.mxu1 %v501_v53 }
  0xf3   : > { %v455_v59 = vadd.f32 %v965_v25, %v454_v58  ;;  %v493_v60 = vmax.f32 %v463_v56, 0.0 }
  0xf4   : > { %v1068_v61 = vpop.f32.mrf.mxu0 }
  0xf5   : > { %v491_v63 = vmax.f32 %v455_v59, 0.0  ;;  %v503_v3 = vpack.c.bf16 %v493_v60, %v492_v0  ;;  %v476_v7 = vadd.f32 %v1068_v61, %v965_v25 }
  0xf6   : > { %v467_v1 = vpop.f32.mrf.mxu0 }
  0xf7   : > { %v502_v2 = vpack.c.bf16 %v491_v63, %v490_v62  ;;  %v468_v5 = vadd.f32 %v965_v25, %v467_v1  ;;  %v496_v13 = vmax.f32 %v476_v7, 0.0 }
  0xf8   : > { %v1069_v4 = vpop.f32.mrf.mxu0 }
  0xf9   : > { %v479_v6 = vadd.f32 %v1069_v4, %v965_v25  ;;  %1094 = vmatprep.mubr.bf16.mxu1 %v502_v2  ;;  %v494_v11 = vmax.f32 %v468_v5, 0.0 }
  0xfa   : > { %v470_v8 = vpop.f32.mrf.mxu0  ;;  %1095 = vmatmul.mubr.bf16.gmra.mxu1 %v503_v3 }
  0xfb   : > { %v471_v9 = vadd.f32 %v965_v25, %v470_v8  ;;  %v497_v10 = vmax.f32 %v479_v6, 0.0 }
  0xfd   : > { %v495_v12 = vmax.f32 %v471_v9, 0.0  ;;  %v505_v15 = vpack.c.bf16 %v497_v10, %v496_v13 }
  0xff   : > { %v504_v14 = vpack.c.bf16 %v495_v12, %v494_v11  ;;  %v993_v12 = vld [vmem:[%s1507_s6] ss:$0 sm:$0xff] }
 0x101   : > { %1098 = vmatprep.mubr.bf16.mxu1 %v504_v14 }
 0x102   : > { %1099 = vmatmul.mubr.bf16.gmra.mxu1 %v505_v15 }
 0x1aa   : > { %v1088_v19 = vpop.f32.mrf.mxu1 }
 0x1ab   : > { %v620_v25 = vadd.f32 %v1088_v19, %v984_v21 }
 0x1ac   : > { %v611_v20 = vpop.f32.mrf.mxu1 }
 0x1ad   : > { %v612_v23 = vadd.f32 %v984_v21, %v611_v20  ;;  %v676_v32 = vmax.f32 %v620_v25, 0.0 }
 0x1ae   : > { %v1089_v22 = vpop.f32.mrf.mxu1 }
 0x1af   : > { %v623_v24 = vadd.f32 %v1089_v22, %v984_v21  ;;  %v674_v30 = vmax.f32 %v612_v23, 0.0 }
 0x1b0   : > { %v614_v26 = vpop.f32.mrf.mxu1 }
 0x1b1   : > { %v615_v27 = vadd.f32 %v984_v21, %v614_v26  ;;  %v677_v28 = vmax.f32 %v623_v24, 0.0 }
 0x1b2   : > { %v1092_v29 = vpop.f32.mrf.mxu1 }
 0x1b3   : > { %v675_v31 = vmax.f32 %v615_v27, 0.0  ;;  %v691_v35 = vpack.c.bf16 %v677_v28, %v676_v32  ;;  %v636_v39 = vadd.f32 %v1092_v29, %v984_v21 }
 0x1b4   : > { %v627_v33 = vpop.f32.mrf.mxu1 }
 0x1b5   : > { %v690_v34 = vpack.c.bf16 %v675_v31, %v674_v30  ;;  %v628_v37 = vadd.f32 %v984_v21, %v627_v33  ;;  %v680_v46 = vmax.f32 %v636_v39, 0.0 }
 0x1b6   : > { %v1093_v36 = vpop.f32.mrf.mxu1 }
 0x1b7   : > { %v639_v38 = vadd.f32 %v1093_v36, %v984_v21  ;;  %1118 = vmatprep.mubr.bf16.mxu0 %v690_v34  ;;  %v678_v44 = vmax.f32 %v628_v37, 0.0 }
 0x1b8   : > { %v630_v40 = vpop.f32.mrf.mxu1  ;;  %1119 = vmatmul.mubr.bf16.vlgmr.msra.gmra.mxu0 %v691_v35 }
 0x1b9   : > { %v631_v41 = vadd.f32 %v984_v21, %v630_v40  ;;  %v681_v42 = vmax.f32 %v639_v38, 0.0 }
 0x1ba   : > { %v1096_v43 = vpop.f32.mrf.mxu1 }
 0x1bb   : > { %v679_v45 = vmax.f32 %v631_v41, 0.0  ;;  %v693_v49 = vpack.c.bf16 %v681_v42, %v680_v46  ;;  %v652_v53 = vadd.f32 %v1096_v43, %v984_v21 }
 0x1bc   : > { %v643_v47 = vpop.f32.mrf.mxu1 }
 0x1bd   : > { %v692_v48 = vpack.c.bf16 %v679_v45, %v678_v44  ;;  %v644_v51 = vadd.f32 %v984_v21, %v643_v47  ;;  %v684_v60 = vmax.f32 %v652_v53, 0.0 }
 0x1be   : > { %v1097_v50 = vpop.f32.mrf.mxu1 }
 0x1bf   : > { %v655_v52 = vadd.f32 %v1097_v50, %v984_v21  ;;  %1122 = vmatprep.mubr.bf16.mxu0 %v692_v48  ;;  %v682_v58 = vmax.f32 %v644_v51, 0.0 }
 0x1c0   : > { %v646_v54 = vpop.f32.mrf.mxu1  ;;  %1123 = vmatmul.mubr.bf16.gmra.mxu0 %v693_v49 }
 0x1c1   : > { %v647_v55 = vadd.f32 %v984_v21, %v646_v54  ;;  %v685_v56 = vmax.f32 %v655_v52, 0.0 }
 0x1c2   : > { %v1100_v57 = vpop.f32.mrf.mxu1 }
 0x1c3   : > { %v683_v59 = vmax.f32 %v647_v55, 0.0  ;;  %v695_v63 = vpack.c.bf16 %v685_v56, %v684_v60  ;;  %v668_v3 = vadd.f32 %v1100_v57, %v984_v21 }
 0x1c4   : > { %v659_v61 = vpop.f32.mrf.mxu1 }
 0x1c5   : > { %v694_v62 = vpack.c.bf16 %v683_v59, %v682_v58  ;;  %v660_v1 = vadd.f32 %v984_v21, %v659_v61  ;;  %v688_v9 = vmax.f32 %v668_v3, 0.0 }
 0x1c6   : > { %v1101_v0 = vpop.f32.mrf.mxu1 }
 0x1c7   : > { %v671_v2 = vadd.f32 %v1101_v0, %v984_v21  ;;  %1126 = vmatprep.mubr.bf16.mxu0 %v694_v62  ;;  %v686_v7 = vmax.f32 %v660_v1, 0.0 }
 0x1c8   : > { %v662_v4 = vpop.f32.mrf.mxu1  ;;  %1127 = vmatmul.mubr.bf16.gmra.mxu0 %v695_v63 }
 0x1c9   : > { %v663_v5 = vadd.f32 %v984_v21, %v662_v4  ;;  %v689_v6 = vmax.f32 %v671_v2, 0.0 }
 0x1cb   : > { %v687_v8 = vmax.f32 %v663_v5, 0.0  ;;  %v697_v11 = vpack.c.bf16 %v689_v6, %v688_v9 }
 0x1cd   : > { %v696_v10 = vpack.c.bf16 %v687_v8, %v686_v7 }
 0x1cf   : > { %1130 = vmatprep.mubr.bf16.mxu0 %v696_v10 }
 0x1d0   : > { %1131 = vmatmul.mubr.bf16.gmra.mxu0 %v697_v11 }
 0x278   : > { %v1120_v13 = vpop.f32.mrf.mxu0 }
 0x279   : > { %v812_v14 = vadd.f32 %v1120_v13, %v993_v12 }
 0x27a   : > { %v803_v15 = vpop.f32.mrf.mxu0 }
 0x27b   : > { %868 = vst [vmem:[%s1432_s20 + $0x10] sm:$0xff] %v812_v14  ;;  %v804_v16 = vadd.f32 %v993_v12, %v803_v15 }
 0x27c   : > { %v1121_v17 = vpop.f32.mrf.mxu0 }
 0x27d   : > { %866 = vst [vmem:[%s1432_s20] sm:$0xff] %v804_v16  ;;  %v815_v18 = vadd.f32 %v1121_v17, %v993_v12 }
 0x27e   : > { %v806_v19 = vpop.f32.mrf.mxu0 }
 0x27f   : > { %869 = vst [vmem:[%s1432_s20 + $0x18] sm:$0xff] %v815_v18  ;;  %v807_v20 = vadd.f32 %v993_v12, %v806_v19 }
 0x280   : > { %v1124_v21 = vpop.f32.mrf.mxu0 }
 0x281   : > { %867 = vst [vmem:[%s1432_s20 + $0x8] sm:$0xff] %v807_v20  ;;  %v828_v22 = vadd.f32 %v1124_v21, %v993_v12 }
 0x282   : > { %v819_v23 = vpop.f32.mrf.mxu0 }
 0x283   : > { %872 = vst [vmem:[%s1432_s20 + $0x30] sm:$0xff] %v828_v22  ;;  %v820_v24 = vadd.f32 %v993_v12, %v819_v23 }
 0x284   : > { %v1125_v25 = vpop.f32.mrf.mxu0 }
 0x285   : > { %870 = vst [vmem:[%s1432_s20 + $0x20] sm:$0xff] %v820_v24  ;;  %v831_v26 = vadd.f32 %v1125_v25, %v993_v12 }
 0x286   : > { %v822_v27 = vpop.f32.mrf.mxu0 }
 0x287   : > { %873 = vst [vmem:[%s1432_s20 + $0x38] sm:$0xff] %v831_v26  ;;  %v823_v28 = vadd.f32 %v993_v12, %v822_v27 }
 0x288   : > { %v1128_v29 = vpop.f32.mrf.mxu0 }
 0x289   : > { %871 = vst [vmem:[%s1432_s20 + $0x28] sm:$0xff] %v823_v28  ;;  %v844_v30 = vadd.f32 %v1128_v29, %v993_v12 }
 0x28a   : > { %v835_v31 = vpop.f32.mrf.mxu0 }
 0x28b   : > { %876 = vst [vmem:[%s1432_s20 + $0x50] sm:$0xff] %v844_v30  ;;  %v836_v32 = vadd.f32 %v993_v12, %v835_v31 }
 0x28c   : > { %v1129_v33 = vpop.f32.mrf.mxu0 }
 0x28d   : > { %874 = vst [vmem:[%s1432_s20 + $0x40] sm:$0xff] %v836_v32  ;;  %v847_v34 = vadd.f32 %v1129_v33, %v993_v12 }
 0x28e   : > { %v838_v35 = vpop.f32.mrf.mxu0 }
 0x28f   : > { %877 = vst [vmem:[%s1432_s20 + $0x58] sm:$0xff] %v847_v34  ;;  %v839_v36 = vadd.f32 %v993_v12, %v838_v35 }
 0x290   : > { %v1132_v37 = vpop.f32.mrf.mxu0 }
 0x291   : > { %875 = vst [vmem:[%s1432_s20 + $0x48] sm:$0xff] %v839_v36  ;;  %v860_v38 = vadd.f32 %v1132_v37, %v993_v12 }
 0x292   : > { %v851_v39 = vpop.f32.mrf.mxu0 }
 0x293   : > { %880 = vst [vmem:[%s1432_s20 + $0x70] sm:$0xff] %v860_v38  ;;  %v852_v40 = vadd.f32 %v993_v12, %v851_v39 }
 0x294   : > { %v1133_v41 = vpop.f32.mrf.mxu0 }
 0x295   : > { %878 = vst [vmem:[%s1432_s20 + $0x60] sm:$0xff] %v852_v40  ;;  %v863_v42 = vadd.f32 %v1133_v41, %v993_v12 }
 0x296   : > { %v854_v43 = vpop.f32.mrf.mxu0 }
 0x297   : > { %881 = vst [vmem:[%s1432_s20 + $0x78] sm:$0xff] %v863_v42  ;;  %v855_v44 = vadd.f32 %v993_v12, %v854_v43 }
 0x299   : > { %879 = vst [vmem:[%s1432_s20 + $0x68] sm:$0xff] %v855_v44 }
 0x29a   : > { %1214 = shalt.err (!%p1211_p3)
}
 0x29b   : > { %s1215_s16 = scalar_lea.hbm %s1453_s8, 2048  ;;  %s1219_s19 = scalar_lea.hbm %s1508_s7, 4096 }
 0x29c   : > { %p1216_p4 = scmp.ne.s32.totalorder %s1453_s8, %s1215_s16  ;;  %p1220_p9 = scmp.lt.s32.totalorder %s1453_s8, %s1508_s7 }
 0x29d   : > { %p1221_p10 = scmp.lt.s32.totalorder %s1219_s19, %s1215_s16 }
 0x29e   : > { %p1217_p7 = pnand %p1216_p4, %p1344_p5 }
 0x29f   : > { %p1222_p11 = por %p1221_p10, %p1220_p9 }
 0x2a0   : > { %p1218_p8 = pneg %p1217_p7 }
 0x2a2   : > { %p1223_p12 = pnand %p1222_p11, %p1218_p8 }
 0x2a4   : > { %1226 = shalt.err (!%p1223_p12)
}
 0x2a5   : > { %s1264_s23 = smov 128   ;;  %s1265_s29 = smov 8  }
 0x2a6   : > { %1134 = dma.vmem_to_hbm [thread:$0]  (%p1344_p5), %s1455_s22, 2048, %s1453_s8, %s1461_s28, %s1264_s23, %s1264_s23, %s1265_s29  }
 0x2a7 PF: > { %p1140_p13 = scmp.ge.s32.totalorder %s1261_s27, 2  ;;  %s911_s9 = sand.u32 1, %s1249_s24  }
 0x2a8   : > { %s912_s13 = scalar_lea.sflag [#allocation3], %s911_s9 }
 0x2a9   : > { %p1137_p0 = pnand %p1140_p13, %p1348_p6 }
 0x2ab   : > { %p1138_p1 = pneg %p1137_p0 }
 0x2ad   : > { %1244 = dma.done.wait (%p1138_p1), %s912_s13, 2048  }
 0x2ae   : > { %1246 = vsyncadd (%p1138_p1), %s912_s13, 4294965248  ;;  %p17_p2 = scmp.ge.s32.totalorder %s1331_s30, 4   ;;  %s1511_s24 = smov %s1253_s25 }
 0x2af   : > { %s1512_s25 = smov %s1257_s26  ;;  %s1513_s26 = smov %s1342_s10 }
 0x2b0   : > { %s1514_s27 = smov %s1331_s30  ;;  %19 = sbr.rel (!%p17_p2) target bundleno = 3 (0x3), region = 83 }
 0x2b5   :  { %917 = vsyncpa [#allocation3], 1 }
 0x2b6   :  { %919 = vsyncpa [#allocation3 + $0x1], 1 }

</bundles_post_ra>
